<compile_context>
chip_gen: v6e
topology: v6e:2x2x1
jax: 0.10.0
libtpu: 0.0.40
codegen_flags: <defaults>
</compile_context>

<pallas_src>
import math
import numpy as np

import jax
import jax.numpy as jnp
from jax import lax
from jax.experimental import pallas as pl
from jax.experimental.pallas import tpu as pltpu

LANE = 128            # lane width (last dim of every tile)
BLOCK_ROWS_MAX = 512  # sublane rows per grid step -> up to 512*128 = 65536 elems/step


def make_basis_params(max_degree):
    """Deterministic per-degree constants (mirrors SHBasis.__init__)."""
    params = []
    for k in range(max_degree):
        deg = 2 ** k
        # legendrecoeffs(l).c[::-1]  == Legendre P_l coefficients, lowest->highest.
        c_leg = np.polynomial.legendre.leg2poly(np.eye(deg + 1)[deg])
        coeffs = tuple(float(c) for c in c_leg)
        logcoeff = (-2.0 * math.log(deg) - math.lgamma(deg + 1)
                    + 0.5 * (math.lgamma(2 * deg + 2) - math.log(4 * math.pi)))
        coeff = ((-1.0) ** deg) * math.exp(logcoeff)
        y0scale = math.sqrt((2 * deg + 1) / (4 * math.pi))
        params.append((deg, coeffs, coeff, y0scale))
    return params


def _int_pow(x, n):
    """x**n for integer n >= 1 using only multiplies (binary exponentiation)."""
    result = None
    while n > 0:
        if n & 1:
            result = x if result is None else result * x
        n >>= 1
        if n:
            x = x * x
    return result


def _make_ish_kernel(basis_params):
    n_deg = len(basis_params)

    def kernel(a_ref, b_ref, c_ref, rough_ref, out_ref):
        # Every ref tile is a full (block_rows, 128) f32 slab -> full vreg occupancy.
        a = a_ref[...]
        b = b_ref[...]
        c = c_ref[...]
        rough = rough_ref[...]

        # kappa = 1/(rough+1e-8); Al argument uses 1/(kappa+1e-8) (keep both eps,
        # matching torch exactly; the algebraic collapse was flagged as risky).
        kappa = 1.0 / (rough + 1e-8)
        inv_kp = 1.0 / (kappa + 1e-8)

        a2b2 = a * a + b * b
        r2 = a2b2 + c * c
        pos2 = a2b2 > 0.0
        posr = r2 > 0.0

        # rsqrt with safe arguments (rsqrt(0)=inf must stay behind the where).
        inv_n2 = lax.rsqrt(jnp.where(pos2, a2b2, 1.0))
        inv_r = lax.rsqrt(jnp.where(posr, r2, 1.0))

        # phi = atan2(b, a):  cos(phi)=a/n2, sin(phi)=b/n2; atan2(0,0)=0 -> (1, 0).
        cos_phi = jnp.where(pos2, a * inv_n2, 1.0)
        sin_phi = jnp.where(pos2, b * inv_n2, 0.0)

        # theta = atan2(c, n2) - pi/2 (n2 >= 0):
        #   cos(theta) = c/r, sin(theta) = -n2/r; degenerate r=0 -> theta = -pi/2.
        n2 = a2b2 * inv_n2                       # == sqrt(a^2+b^2), exactly 0 at 0
        cos_theta = jnp.where(posr, c * inv_r, 0.0)
        sin_theta = jnp.where(posr, -n2 * inv_r, -1.0)

        # Single EUP exp shared by all degrees when max_degree > 1:
        # Al(l, kappa) = base^(l*(l+1)) with base = exp(-inv_kp/2).
        base = jnp.exp(-0.5 * inv_kp) if n_deg > 1 else None

        row = 0
        for (deg, coeffs, coeff, y0scale) in basis_params:
            if base is None:
                al = jnp.exp((-deg * (deg + 1) * 0.5) * inv_kp)
            else:
                al = _int_pow(base, deg * (deg + 1))

            # Legendre P_l(cos theta) via Horner (coeffs lowest->highest).
            v = jnp.full_like(cos_theta, coeffs[-1])
            for ck in coeffs[-2::-1]:
                v = v * cos_theta + ck
            y0 = y0scale * v

            # sin(theta)^deg and cos/sin(deg*phi); deg is a power of 2 -> doubling.
            sp = sin_theta
            cdp, sdp = cos_phi, sin_phi
            d = 1
            while d < deg:
                sp = sp * sp
                cdp, sdp = cdp * cdp - sdp * sdp, 2.0 * cdp * sdp
                d *= 2

            # Full (block_rows, 128) unmasked tile stores.
            out_ref[row + 0] = al * y0
            out_ref[row + 1] = al * (coeff * sp * cdp)
            out_ref[row + 2] = al * (coeff * sp * sdp)
            row += 3

    return kernel


def ish_forward(vec, roughness, max_degree=1):
    """vec: (N, 3) f32, roughness: (N, 1) f32 -> (N, 3*max_degree) f32."""
    basis_params = make_basis_params(max_degree)
    D = len(basis_params)
    N = vec.shape[0]

    # Tile sizing: block_rows is a multiple of 8 (sublane-aligned), capped so a
    # double-buffered (4 in + 3*D out) working set stays far below scoped VMEM
    # on all generations (v7x: 64 MiB physical), while each grid step still
    # moves ~1-2 MB to amortize per-step overhead.
    rows_needed = pl.cdiv(N, LANE)
    block_rows = min(BLOCK_ROWS_MAX, pl.cdiv(rows_needed, 8) * 8)
    rows_pad = pl.cdiv(rows_needed, block_rows) * block_rows
    n_pad = rows_pad * LANE
    grid = (rows_pad // block_rows,)

    vec_f = vec.astype(jnp.float32)
    rough_f = roughness.astype(jnp.float32).reshape(N)

    def prep(x):  # (N,) -> (rows_pad, LANE): zero-pad + free reshape, no transpose
        return jnp.pad(x, (0, n_pad - N)).reshape(rows_pad, LANE)

    a = prep(vec_f[:, 0])
    b = prep(vec_f[:, 1])
    c = prep(vec_f[:, 2])
    rough = prep(rough_f)

    # Advisory cost model: memory-bound, a handful of transcendentals per element.
    cost = pl.CostEstimate(
        flops=int((25 + 20 * D) * n_pad),
        transcendentals=int((4 + D) * n_pad),
        bytes_accessed=int(4 * (4 + 3 * D) * n_pad),
    )

    comp_spec = pl.BlockSpec((block_rows, LANE), lambda i: (i, 0))
    out = pl.pallas_call(
        _make_ish_kernel(basis_params),
        out_shape=jax.ShapeDtypeStruct((3 * D, rows_pad, LANE), jnp.float32),
        grid=grid,
        in_specs=[comp_spec, comp_spec, comp_spec, comp_spec],
        out_specs=pl.BlockSpec((3 * D, block_rows, LANE), lambda i: (0, i, 0)),
        compiler_params=pltpu.CompilerParams(dimension_semantics=("parallel",)),
        cost_estimate=cost,
    )(a, b, c, rough)

    # (3*D, rows_pad, LANE) -> (3*D, n_pad) -> (N, 3*D); feature order matches
    # torch's cat order.  Only this tiny final transpose remains outside the kernel.
    return out.reshape(3 * D, n_pad)[:, :N].T


def ish_reference(vec, roughness, max_degree=1):
    """Pure-JAX mirror of the PyTorch forward (for verification)."""
    basis_params = make_basis_params(max_degree)
    kappa = 1.0 / (roughness + 1e-8)
    a, b, c = vec[:, 0:1], vec[:, 1:2], vec[:, 2:3]
    norm2d = jnp.sqrt(a ** 2 + b ** 2)
    phi = jnp.arctan2(b, a)
    theta = jnp.arctan2(c, norm2d) - np.pi / 2
    outs = []
    for (deg, coeffs, coeff, y0scale) in basis_params:
        al = jnp.exp(-deg * (deg + 1) / 2.0 / (kappa + 1e-8))
        x = jnp.cos(theta)
        xpow = x[..., None] ** jnp.arange(len(coeffs), dtype=jnp.float32)
        v = (xpow * jnp.asarray(coeffs, dtype=jnp.float32)).sum(-1)
        y0 = y0scale * v
        s = jnp.sin(theta) ** deg
        yl1 = coeff * s * jnp.cos(deg * phi)
        yl2 = coeff * s * jnp.sin(deg * phi)
        outs.append(al * jnp.concatenate([y0, yl1, yl2], axis=-1))
    return jnp.concatenate(outs, axis=1)


if __name__ == "__main__":
    key = jax.random.PRNGKey(0)
    k1, k2 = jax.random.split(key)

    N = 8
    vec = jax.random.normal(k1, (N, 3), dtype=jnp.float32)
    roughness = jax.random.uniform(k2, (N, 1), dtype=jnp.float32,
                                   minval=0.05, maxval=1.0)

    out = ish_forward(vec, roughness, max_degree=1)
    out = jax.block_until_ready(out)

    ref = ish_reference(vec, roughness, max_degree=1)
    assert out.shape == ref.shape == (N, 3), (out.shape, ref.shape)
    assert bool(jnp.allclose(out, ref, atol=1e-5)), (out, ref)

    print("KERNEL_OK")
</pallas_src>

<mosaic_0001>
module attributes {stable_mosaic.version = 11 : i64} {
  func.func @kernel(%arg0: i32, %arg1: memref<8x128xf32, #tpu.memory_space<vmem>>, %arg2: memref<8x128xf32, #tpu.memory_space<vmem>>, %arg3: memref<8x128xf32, #tpu.memory_space<vmem>>, %arg4: memref<8x128xf32, #tpu.memory_space<vmem>>, %arg5: memref<3x8x128xf32, #tpu.memory_space<vmem>>) attributes {dimension_semantics = [#tpu.dimension_semantics<parallel>], iteration_bounds = array<i64: 1>, scalar_prefetch = 0 : i64, scratch_operands = 0 : i64, tpu.core_type = #tpu.core_type<tc>, window_params = [{transform_indices = @transform_0, window_bounds = array<i64: 8, 128>}, {transform_indices = @transform_1, window_bounds = array<i64: 8, 128>}, {transform_indices = @transform_2, window_bounds = array<i64: 8, 128>}, {transform_indices = @transform_3, window_bounds = array<i64: 8, 128>}, {transform_indices = @transform_4, window_bounds = array<i64: 3, 8, 128>}]} {
    %c0 = arith.constant 0 : index
    %c0_0 = arith.constant 0 : index
    %0 = vector.load %arg1[%c0, %c0_0] : memref<8x128xf32, #tpu.memory_space<vmem>>, vector<8x128xf32>
    %c0_1 = arith.constant 0 : index
    %c0_2 = arith.constant 0 : index
    %1 = vector.load %arg2[%c0_1, %c0_2] : memref<8x128xf32, #tpu.memory_space<vmem>>, vector<8x128xf32>
    %c0_3 = arith.constant 0 : index
    %c0_4 = arith.constant 0 : index
    %2 = vector.load %arg3[%c0_3, %c0_4] : memref<8x128xf32, #tpu.memory_space<vmem>>, vector<8x128xf32>
    %c0_5 = arith.constant 0 : index
    %c0_6 = arith.constant 0 : index
    %3 = vector.load %arg4[%c0_5, %c0_6] : memref<8x128xf32, #tpu.memory_space<vmem>>, vector<8x128xf32>
    %cst = arith.constant 9.99999993E-9 : f32
    %4 = vector.broadcast %cst : f32 to vector<8x128xf32>
    %5 = arith.addf %3, %4 : vector<8x128xf32>
    %cst_7 = arith.constant 1.000000e+00 : f32
    %6 = vector.broadcast %cst_7 : f32 to vector<8x128xf32>
    %7 = arith.divf %6, %5 : vector<8x128xf32>
    %cst_8 = arith.constant 9.99999993E-9 : f32
    %8 = vector.broadcast %cst_8 : f32 to vector<8x128xf32>
    %9 = arith.addf %7, %8 : vector<8x128xf32>
    %cst_9 = arith.constant 1.000000e+00 : f32
    %10 = vector.broadcast %cst_9 : f32 to vector<8x128xf32>
    %11 = arith.divf %10, %9 : vector<8x128xf32>
    %12 = arith.mulf %0, %0 : vector<8x128xf32>
    %13 = arith.mulf %1, %1 : vector<8x128xf32>
    %14 = arith.addf %12, %13 : vector<8x128xf32>
    %15 = arith.mulf %2, %2 : vector<8x128xf32>
    %16 = arith.addf %14, %15 : vector<8x128xf32>
    %cst_10 = arith.constant 0.000000e+00 : f32
    %17 = vector.broadcast %cst_10 : f32 to vector<8x128xf32>
    %18 = arith.cmpf ogt, %14, %17 : vector<8x128xf32>
    %cst_11 = arith.constant 0.000000e+00 : f32
    %19 = vector.broadcast %cst_11 : f32 to vector<8x128xf32>
    %20 = arith.cmpf ogt, %16, %19 : vector<8x128xf32>
    %cst_12 = arith.constant 1.000000e+00 : f32
    %21 = vector.broadcast %cst_12 : f32 to vector<8x128xf32>
    %22 = arith.select %18, %14, %21 : vector<8x128xi1>, vector<8x128xf32>
    %23 = math.rsqrt %22 : vector<8x128xf32>
    %cst_13 = arith.constant 1.000000e+00 : f32
    %24 = vector.broadcast %cst_13 : f32 to vector<8x128xf32>
    %25 = arith.select %20, %16, %24 : vector<8x128xi1>, vector<8x128xf32>
    %26 = math.rsqrt %25 : vector<8x128xf32>
    %27 = arith.mulf %0, %23 : vector<8x128xf32>
    %cst_14 = arith.constant 1.000000e+00 : f32
    %28 = vector.broadcast %cst_14 : f32 to vector<8x128xf32>
    %29 = arith.select %18, %27, %28 : vector<8x128xi1>, vector<8x128xf32>
    %30 = arith.mulf %1, %23 : vector<8x128xf32>
    %cst_15 = arith.constant 0.000000e+00 : f32
    %31 = vector.broadcast %cst_15 : f32 to vector<8x128xf32>
    %32 = arith.select %18, %30, %31 : vector<8x128xi1>, vector<8x128xf32>
    %33 = arith.mulf %14, %23 : vector<8x128xf32>
    %34 = arith.mulf %2, %26 : vector<8x128xf32>
    %cst_16 = arith.constant 0.000000e+00 : f32
    %35 = vector.broadcast %cst_16 : f32 to vector<8x128xf32>
    %36 = arith.select %20, %34, %35 : vector<8x128xi1>, vector<8x128xf32>
    %cst_17 = arith.constant 0.000000e+00 : f32
    %37 = vector.broadcast %cst_17 : f32 to vector<8x128xf32>
    %38 = arith.subf %37, %33 : vector<8x128xf32>
    %39 = arith.mulf %38, %26 : vector<8x128xf32>
    %cst_18 = arith.constant -1.000000e+00 : f32
    %40 = vector.broadcast %cst_18 : f32 to vector<8x128xf32>
    %41 = arith.select %20, %39, %40 : vector<8x128xi1>, vector<8x128xf32>
    %cst_19 = arith.constant -1.000000e+00 : f32
    %42 = vector.broadcast %cst_19 : f32 to vector<8x128xf32>
    %43 = arith.mulf %42, %11 : vector<8x128xf32>
    %44 = math.exp %43 : vector<8x128xf32>
    %cst_20 = arith.constant 1.000000e+00 : f32
    %45 = vector.broadcast %cst_20 : f32 to vector<8x128xf32>
    %46 = arith.mulf %45, %36 : vector<8x128xf32>
    %cst_21 = arith.constant 0.000000e+00 : f32
    %47 = vector.broadcast %cst_21 : f32 to vector<8x128xf32>
    %48 = arith.addf %46, %47 : vector<8x128xf32>
    %cst_22 = arith.constant 0.488602519 : f32
    %49 = vector.broadcast %cst_22 : f32 to vector<8x128xf32>
    %50 = arith.mulf %49, %48 : vector<8x128xf32>
    %51 = arith.mulf %44, %50 : vector<8x128xf32>
    %c0_23 = arith.constant 0 : index
    %c0_24 = arith.constant 0 : index
    %c0_25 = arith.constant 0 : index
    %52 = vector.load %arg5[%c0_23, %c0_24, %c0_25] : memref<3x8x128xf32, #tpu.memory_space<vmem>>, vector<1x8x128xf32>
    %53 = vector.shape_cast %52 : vector<1x8x128xf32> to vector<8x128xf32>
    %54 = vector.shape_cast %51 : vector<8x128xf32> to vector<1x8x128xf32>
    tpu.vector_store %arg5[%c0_23, %c0_24, %c0_25], %54 {strides = array<i32>} : memref<3x8x128xf32, #tpu.memory_space<vmem>>, vector<1x8x128xf32>,
    %cst_26 = arith.constant -0.690988302 : f32
    %55 = vector.broadcast %cst_26 : f32 to vector<8x128xf32>
    %56 = arith.mulf %55, %41 : vector<8x128xf32>
    %57 = arith.mulf %56, %29 : vector<8x128xf32>
    %58 = arith.mulf %44, %57 : vector<8x128xf32>
    %c1 = arith.constant 1 : index
    %c0_27 = arith.constant 0 : index
    %c0_28 = arith.constant 0 : index
    %59 = vector.load %arg5[%c1, %c0_27, %c0_28] : memref<3x8x128xf32, #tpu.memory_space<vmem>>, vector<1x8x128xf32>
    %60 = vector.shape_cast %59 : vector<1x8x128xf32> to vector<8x128xf32>
    %61 = vector.shape_cast %58 : vector<8x128xf32> to vector<1x8x128xf32>
    tpu.vector_store %arg5[%c1, %c0_27, %c0_28], %61 {strides = array<i32>} : memref<3x8x128xf32, #tpu.memory_space<vmem>>, vector<1x8x128xf32>,
    %cst_29 = arith.constant -0.690988302 : f32
    %62 = vector.broadcast %cst_29 : f32 to vector<8x128xf32>
    %63 = arith.mulf %62, %41 : vector<8x128xf32>
    %64 = arith.mulf %63, %32 : vector<8x128xf32>
    %65 = arith.mulf %44, %64 : vector<8x128xf32>
    %c2 = arith.constant 2 : index
    %c0_30 = arith.constant 0 : index
    %c0_31 = arith.constant 0 : index
    %66 = vector.load %arg5[%c2, %c0_30, %c0_31] : memref<3x8x128xf32, #tpu.memory_space<vmem>>, vector<1x8x128xf32>
    %67 = vector.shape_cast %66 : vector<1x8x128xf32> to vector<8x128xf32>
    %68 = vector.shape_cast %65 : vector<8x128xf32> to vector<1x8x128xf32>
    tpu.vector_store %arg5[%c2, %c0_30, %c0_31], %68 {strides = array<i32>} : memref<3x8x128xf32, #tpu.memory_space<vmem>>, vector<1x8x128xf32>,
    return
  }
  func.func @transform_0(%arg0: i32) -> (i32, i32) {
    %c0_i32 = arith.constant 0 : i32
    %c0_i32_0 = arith.constant 0 : i32
    return %arg0, %c0_i32 : i32, i32
  }
  func.func @transform_1(%arg0: i32) -> (i32, i32) {
    %c0_i32 = arith.constant 0 : i32
    %c0_i32_0 = arith.constant 0 : i32
    return %arg0, %c0_i32 : i32, i32
  }
  func.func @transform_2(%arg0: i32) -> (i32, i32) {
    %c0_i32 = arith.constant 0 : i32
    %c0_i32_0 = arith.constant 0 : i32
    return %arg0, %c0_i32 : i32, i32
  }
  func.func @transform_3(%arg0: i32) -> (i32, i32) {
    %c0_i32 = arith.constant 0 : i32
    %c0_i32_0 = arith.constant 0 : i32
    return %arg0, %c0_i32 : i32, i32
  }
  func.func @transform_4(%arg0: i32) -> (i32, i32, i32) {
    %c0_i32 = arith.constant 0 : i32
    %c0_i32_0 = arith.constant 0 : i32
    %c0_i32_1 = arith.constant 0 : i32
    return %c0_i32, %arg0, %c0_i32_0 : i32, i32, i32
  }
}

</mosaic_0001>

<bundles_post_ra>
// kernel: tpu_custom_call.1
= control target key start
LH: loop header
LB: loop body
LE: loop exit
PB: predicated region body
PF: predicated region fallthrough
CT: control target
= control target key end

     0   :  { %9 = vsyncpa [#allocation3], 0  ;;  %s309_s0 = inlined_call_operand.hbm [shape: f32[8,128], index: 0, kind: input, shape index: {}]   ;;  %s310_s1 = inlined_call_operand.hbm [shape: f32[8,128], index: 1, kind: input, shape index: {}]   ;;  %s311_s2 = inlined_call_operand.hbm [shape: f32[8,128], index: 2, kind: input, shape index: {}]   ;;  %s312_s3 = inlined_call_operand.hbm [shape: f32[8,128], index: 3, kind: input, shape index: {}]   ;;  %s313_s4 = inlined_call_operand.hbm [shape: f32[3,8,128], index: 4, kind: output, shape index: {}]  }
   0x1   :  { %10 = vsyncpa [#allocation6], 0 }
   0x2   :  { %11 = vsyncpa [#allocation9], 0 }
   0x3   :  { %12 = vsyncpa [#allocation4], 0  ;;  %s256_s15 = smov [#allocation5]   ;;  %s257_s17 = smov [#allocation2]  }
   0x4   :  { %s29_s16 = sshll.u32 %s256_s15, 4  ;;  %s19_s18 = sshll.u32 %s257_s17, 4  ;;  %s30_s16 = int_to_ptr.vmem [resolvable:$true] %s29_s16  ;;  %s20_s18 = int_to_ptr.vmem [resolvable:$true] %s19_s18 }
   0x5   :  { %s156_s19 = scalar_lea.vmem %s30_s16, 128  ;;  %p161_p1 = scmp.lt.s32.totalorder %s30_s16, %s30_s16 }
   0x6   :  { %p157_p0 = scmp.ne.s32.totalorder %s30_s16, %s156_s19  ;;  %p162_p2 = scmp.lt.s32.totalorder %s156_s19, %s156_s19 }
   0x8   :  { %p163_p3 = por %p162_p2, %p161_p1 }
   0xa   :  { %p164_p4 = pnand %p163_p3, %p157_p0 }
   0xc   :  { %167 = shalt.err (!%p164_p4)
}
   0xd   :  { %32 = dma.hbm_to_vmem [thread:$0]  %s310_s1, 128, %s30_s16, [#allocation6]  }
   0xe   :  { %s176_s22 = scalar_lea.vmem %s20_s18, 128  ;;  %p181_p6 = scmp.lt.s32.totalorder %s20_s18, %s20_s18 }
   0xf   :  { %p177_p5 = scmp.ne.s32.totalorder %s20_s18, %s176_s22  ;;  %p182_p7 = scmp.lt.s32.totalorder %s176_s22, %s176_s22 }
  0x11   :  { %p183_p8 = por %p182_p7, %p181_p6 }
  0x13   :  { %p184_p9 = pnand %p183_p8, %p177_p5 }
  0x15   :  { %187 = shalt.err (!%p184_p9)
}
  0x16   :  { %22 = dma.hbm_to_vmem [thread:$0]  %s309_s0, 128, %s20_s18, [#allocation3]  }
  0x17   :  { %s258_s25 = smov [#allocation7]   ;;  %s259_s27 = smov [#allocation8]  }
  0x18   :  { %s39_s26 = sshll.u32 %s258_s25, 4  ;;  %s49_s28 = sshll.u32 %s259_s27, 4  ;;  %s40_s26 = int_to_ptr.vmem [resolvable:$true] %s39_s26  ;;  %s50_s28 = int_to_ptr.vmem [resolvable:$true] %s49_s28 }
  0x19   :  { %s196_s29 = scalar_lea.vmem %s40_s26, 128  ;;  %p201_p11 = scmp.lt.s32.totalorder %s40_s26, %s40_s26 }
  0x1a   :  { %p197_p10 = scmp.ne.s32.totalorder %s40_s26, %s196_s29  ;;  %p202_p12 = scmp.lt.s32.totalorder %s196_s29, %s196_s29 }
  0x1c   :  { %p203_p13 = por %p202_p12, %p201_p11 }
  0x1e   :  { %p204_p0 = pnand %p203_p13, %p197_p10 }
  0x20   :  { %207 = shalt.err (!%p204_p0)
}
  0x21   :  { %42 = dma.hbm_to_vmem [thread:$0]  %s311_s2, 128, %s40_s26, [#allocation6]  }
  0x22   :  { %s216_s5 = scalar_lea.vmem %s50_s28, 128  ;;  %p221_p2 = scmp.lt.s32.totalorder %s50_s28, %s50_s28 }
  0x23   :  { %p217_p1 = scmp.ne.s32.totalorder %s50_s28, %s216_s5  ;;  %p222_p3 = scmp.lt.s32.totalorder %s216_s5, %s216_s5 }
  0x25   :  { %p223_p4 = por %p222_p3, %p221_p2 }
  0x27   :  { %p224_p5 = pnand %p223_p4, %p217_p1 }
  0x29   :  { %227 = shalt.err (!%p224_p5)
}
  0x2a   :  { %52 = dma.hbm_to_vmem [thread:$0]  %s312_s3, 128, %s50_s28, [#allocation9]  }
  0x2b   :  { %248 = dma.done.wait [#allocation3], 128  }
  0x2c   :  { %249 = vsyncadd [#allocation3], 4294967168 }
  0x2d   :  { %250 = dma.done.wait [#allocation6], 256  }
  0x2e   :  { %251 = vsyncadd [#allocation6], 4294967040 }
  0x2f   :  { %252 = dma.done.wait [#allocation9], 128  }
  0x30   :  { %253 = vsyncadd [#allocation9], 4294967168  ;;  %v65_v0 = vld [vmem:[#allocation2] sm:$0xff]  ;;  %v66_v1 = vld [vmem:[#allocation5] sm:$0xff]  ;;  %s260_s2 = smov [#allocation10]  }
  0x31   :  { %v68_v2 = vld [vmem:[#allocation8] sm:$0xff]  ;;  %v75_v3 = vmul.f32 %v65_v0, %v65_v0  ;;  %v76_v4 = vmul.f32 %v66_v1, %v66_v1  ;;  %v67_v7 = vld [vmem:[#allocation7] sm:$0xff]  ;;  %s117_s3 = sshll.u32 %s260_s2, 4  ;;  %s118_s3 = int_to_ptr.vmem [resolvable:$true] %s117_s3 }
  0x32   :  { %v69_v5 = vadd.f32 1e-08, %v68_v2  ;;  %v78_v8 = vmul.f32 %v67_v7, %v67_v7  ;;  %s228_s7 = scalar_lea.vmem %s118_s3, 384  ;;  %p233_p7 = scmp.lt.s32.totalorder %s118_s3, %s118_s3 }
  0x33   :  { %v77_v6 = vadd.f32 %v76_v4, %v75_v3  ;;  %p229_p6 = scmp.ne.s32.totalorder %s118_s3, %s228_s7  ;;  %p234_p8 = scmp.lt.s32.totalorder %s228_s7, %s228_s7 }
  0x34   :  { %138 = vrcp.f32 %v69_v5 }
  0x35   :  { %vm80_vm0 = vcmp.gt.f32.partialorder %v77_v6, 0.0  ;;  %v79_v10 = vadd.f32 %v78_v8, %v77_v6  ;;  %p235_p9 = por %p234_p8, %p233_p7 }
  0x36   :  { %v82_v9 = vsel %vm80_vm0, %v77_v6, 1.0 }
  0x37   :  { %140 = vrsqrt.f32 %v82_v9  ;;  %vm81_vm1 = vcmp.gt.f32.partialorder %v79_v10, 0.0  ;;  %p236_p10 = pnand %p235_p9, %p229_p6 }
  0x38   :  { %v84_v13 = vsel %vm81_vm1, %v79_v10, 1.0 }
  0x41   :  { %v139_v11 = vpop.eup %138 }
  0x42   :  { %v72_v12 = vadd.f32 1e-08, %v139_v11 }
  0x44   :  { %142 = vrcp.f32 %v72_v12  ;;  %v141_v14 = vpop.eup %140 }
  0x45   :  { %144 = vrsqrt.f32 %v84_v13  ;;  %v90_v15 = vmul.f32 %v141_v14, %v77_v6  ;;  %v86_v23 = vmul.f32 %v141_v14, %v65_v0  ;;  %v88_v25 = vmul.f32 %v141_v14, %v66_v1 }
  0x47   :  { %v93_v17 = vsub.f32 0.0, %v90_v15  ;;  %v87_v28 = vsel %vm80_vm0, %v86_v23, 1.0  ;;  %v89_v29 = vsel %vm80_vm0, %v88_v25, 0.0 }
  0x51   :  { %v143_v16 = vpop.eup %142 }
  0x52   :  { %v145_v18 = vpop.eup %144  ;;  %v96_v19 = vmul.f32 -1.0, %v143_v16 }
  0x53   :  { %v94_v21 = vmul.f32 %v145_v18, %v93_v17  ;;  %v91_v22 = vmul.f32 %v145_v18, %v67_v7 }
  0x54   :  { %v97_v20 = vmul.f32 1.442695, %v96_v19 }
  0x55   :  { %v95_v24 = vsel %vm81_vm1, %v94_v21, -1.0  ;;  %v92_v27 = vsel %vm81_vm1, %v91_v22, 0.0 }
  0x56   :  { %146 = vpow2.f32 %v97_v20  ;;  %v103_v26 = vmul.f32 -0.6909883, %v95_v24  ;;  %v100_v30 = vmul.f32 0.48860252, %v92_v27 }
  0x58   :  { %v104_v31 = vmul.f32 %v103_v26, %v87_v28  ;;  %v108_v32 = vmul.f32 %v103_v26, %v89_v29 }
  0x63   :  { %v147_v33 = vpop.eup %146 }
  0x64   :  { %v101_v34 = vmul.f32 %v147_v33, %v100_v30  ;;  %v105_v35 = vmul.f32 %v147_v33, %v104_v31  ;;  %v109_v36 = vmul.f32 %v147_v33, %v108_v32 }
  0x66   :  { %102 = vst [vmem:[#allocation10] sm:$0xff] %v101_v34  ;;  %107 = vst [vmem:[#allocation10 + $0x8] sm:$0xff] %v105_v35 }
  0x67   :  { %111 = vst [vmem:[#allocation10 + $0x10] sm:$0xff] %v109_v36 }
  0x68   :  { %239 = shalt.err (!%p236_p10)
}
  0x69   :  { %s261_s8 = smov 128   ;;  %s262_s9 = smov 8  }
  0x6a   :  { %123 = dma.vmem_to_hbm [thread:$0]  %s118_s3, 384, %s313_s4, [#allocation4], %s261_s8, %s261_s8, %s262_s9  }
  0x6b   :  { %254 = dma.done.wait [#allocation4], 384  }
  0x6c   :  { %255 = vsyncadd [#allocation4], 4294966912 }
  0x6d   :  { %127 = vsyncpa [#allocation3], 1 }
  0x6e   :  { %128 = vsyncpa [#allocation6], 1 }
  0x6f   :  { %129 = vsyncpa [#allocation9], 1 }
  0x70   :  { %130 = vsyncpa [#allocation4], 1 }

</bundles_post_ra>
